<compile_context>
chip_gen: v6e
topology: v6e:2x2x1
jax: 0.10.0
libtpu: 0.0.40
codegen_flags: <defaults>
</compile_context>

<pallas_src>
import jax
import jax.numpy as jnp
from jax.experimental import pallas as pl
from jax.experimental.pallas import tpu as pltpu


def _softplus(x):
    # Numerically stable softplus using ops that lower cleanly on Mosaic.
    return jnp.maximum(x, 0.0) + jnp.log(1.0 + jnp.exp(-jnp.abs(x)))


def _cond_model_kernel(t_ref, y_ref, x_ref,
                       w1_ref, b1_ref, e1_ref,
                       w2_ref, b2_ref, e2_ref,
                       w4_ref, b4_ref,
                       o_ref):
    f32 = jnp.float32
    bf16 = jnp.bfloat16
    tm = t_ref.shape[0]
    n_steps = e1_ref.shape[0]

    # ---- fused embedding gather (no HBM round trip for gamma) --------------
    # one_hot(t) @ E is an exact row gather of the bf16 table (f32 accumulate).
    t = t_ref[...]                                                  # [TM, 1] i32
    steps = jax.lax.broadcasted_iota(jnp.int32, (tm, n_steps), 1)   # [TM, S]
    onehot = (t == steps).astype(bf16)                              # [TM, S]
    gamma1 = jnp.dot(onehot, e1_ref[...], preferred_element_type=f32)
    gamma2 = jnp.dot(onehot, e2_ref[...], preferred_element_type=f32)

    # ---- lin1 (ConditionalLinear) + softplus + x*y gate ---------------------
    h = jnp.dot(y_ref[...], w1_ref[...], preferred_element_type=f32)
    h = gamma1 * (h + b1_ref[...])
    h = _softplus(h)
    h = x_ref[...] * h                       # f32 epilogue on the VPU

    # ---- lin2 (ConditionalLinear) + softplus --------------------------------
    h2 = jnp.dot(h.astype(bf16), w2_ref[...], preferred_element_type=f32)
    h2 = gamma2 * (h2 + b2_ref[...])
    h2 = _softplus(h2)

    # ---- lin4 (plain Linear) -------------------------------------------------
    out = jnp.dot(h2.astype(bf16), w4_ref[...], preferred_element_type=f32)
    o_ref[...] = (out + b4_ref[...]).astype(o_ref.dtype)


def conditional_model_forward(x_feat, y, t, params, *, block_b=256):
    """Fused Pallas forward of ConditionalModel (guidance=False).

    x_feat: [B, F] f32   (encoder_x output)
    y:      [B, Y] f32   (for guidance=True, concatenate [y, yhat] before call)
    t:      [B]    int32
    params: PyTorch-layout weights:
        lin1_w [F, Y], lin1_b [F], embed1_w [S, F],
        lin2_w [F, F], lin2_b [F], embed2_w [S, F],
        lin4_w [Yo, F], lin4_b [Yo]
    returns [B, Yo] f32
    """
    f32, bf16 = jnp.float32, jnp.bfloat16
    B, F = x_feat.shape
    Y = y.shape[1]
    w1, b1, e1 = params["lin1_w"], params["lin1_b"], params["embed1_w"]
    w2, b2, e2 = params["lin2_w"], params["lin2_b"], params["embed2_w"]
    w4, b4 = params["lin4_w"], params["lin4_b"]
    Yo = w4.shape[0]
    S = e1.shape[0]

    # bf16 MXU operands (weights pre-transposed to [in, out]); f32 biases.
    w1t = w1.T.astype(bf16)
    w2t = w2.T.astype(bf16)
    w4t = w4.T.astype(bf16)
    e1b = e1.astype(bf16)
    e2b = e2.astype(bf16)
    y_bf = y.astype(bf16)
    x_f32 = x_feat.astype(f32)
    b1_2 = b1.reshape(1, F).astype(f32)
    b2_2 = b2.reshape(1, F).astype(f32)
    b4_2 = b4.reshape(1, Yo).astype(f32)
    t2 = t.reshape(B, 1).astype(jnp.int32)

    # Batch tiling: largest multiple-of-8 tile up to block_b; pad B if needed.
    def round_up(a, m):
        return (a + m - 1) // m * m

    tm = min(block_b, round_up(B, 8))
    Bp = round_up(B, tm)
    if Bp != B:
        pad = Bp - B
        x_f32 = jnp.pad(x_f32, ((0, pad), (0, 0)))
        y_bf = jnp.pad(y_bf, ((0, pad), (0, 0)))
        t2 = jnp.pad(t2, ((0, pad), (0, 0)))
    grid = (Bp // tm,)

    flops = 2 * Bp * (Y * F + 2 * S * F + F * F + F * Yo)
    bytes_accessed = (x_f32.size * 4 + y_bf.size * 2 + t2.size * 4
                      + (w1t.size + w2t.size + w4t.size) * 2
                      + (e1b.size + e2b.size) * 2
                      + (b1_2.size + b2_2.size + b4_2.size) * 4
                      + Bp * Yo * 4)
    cost = pl.CostEstimate(flops=flops,
                           transcendentals=4 * Bp * F,
                           bytes_accessed=bytes_accessed)

    row = lambda i: (i, 0)     # batch-tiled operands
    fixed = lambda i: (0, 0)   # VMEM-resident weights / tables / biases

    out = pl.pallas_call(
        _cond_model_kernel,
        out_shape=jax.ShapeDtypeStruct((Bp, Yo), f32),
        grid=grid,
        in_specs=[
            pl.BlockSpec((tm, 1), row),       # t
            pl.BlockSpec((tm, Y), row),       # y   (bf16)
            pl.BlockSpec((tm, F), row),       # x   (f32)
            pl.BlockSpec((Y, F), fixed),      # W1^T (bf16)
            pl.BlockSpec((1, F), fixed),      # b1
            pl.BlockSpec((S, F), fixed),      # embed1 (bf16)
            pl.BlockSpec((F, F), fixed),      # W2^T (bf16)
            pl.BlockSpec((1, F), fixed),      # b2
            pl.BlockSpec((S, F), fixed),      # embed2 (bf16)
            pl.BlockSpec((F, Yo), fixed),     # W4^T (bf16)
            pl.BlockSpec((1, Yo), fixed),     # b4
        ],
        out_specs=pl.BlockSpec((tm, Yo), row),
        compiler_params=pltpu.CompilerParams(
            dimension_semantics=("parallel",)),
        cost_estimate=cost,
    )(t2, y_bf, x_f32, w1t, b1_2, e1b, w2t, b2_2, e2b, w4t, b4_2)
    return out[:B]


def _ref_forward(x_feat, y, t, params):
    """Plain-JAX reference with the same bf16 MXU-operand quantization."""
    f32, bf16 = jnp.float32, jnp.bfloat16
    w1, b1, e1 = params["lin1_w"], params["lin1_b"], params["embed1_w"]
    w2, b2, e2 = params["lin2_w"], params["lin2_b"], params["embed2_w"]
    w4, b4 = params["lin4_w"], params["lin4_b"]

    g1 = jnp.take(e1.astype(bf16), t, axis=0).astype(f32)
    g2 = jnp.take(e2.astype(bf16), t, axis=0).astype(f32)

    h = jnp.dot(y.astype(bf16), w1.T.astype(bf16), preferred_element_type=f32)
    h = g1 * (h + b1[None, :])
    h = _softplus(h)
    h = x_feat * h

    h2 = jnp.dot(h.astype(bf16), w2.T.astype(bf16), preferred_element_type=f32)
    h2 = g2 * (h2 + b2[None, :])
    h2 = _softplus(h2)

    out = jnp.dot(h2.astype(bf16), w4.T.astype(bf16),
                  preferred_element_type=f32)
    return out + b4[None, :]


if __name__ == "__main__":
    # Small shapes consistent with the module (guidance=False).
    B = 8             # batch
    y_dim = 10        # config.data.num_classes
    feature_dim = 128 # config.model.feature_dim (lane-dense)
    n_steps = 11      # config.diffusion.timesteps + 1

    key = jax.random.PRNGKey(0)
    (k_x, k_y, k_t, k_w1, k_b1, k_e1,
     k_w2, k_b2, k_e2, k_w4, k_b4) = jax.random.split(key, 11)

    # PyTorch-default inits: Linear ~ U(-1/sqrt(fan_in), 1/sqrt(fan_in));
    # Embedding.weight.data.uniform_() ~ U(0, 1).
    bd1 = 1.0 / jnp.sqrt(jnp.float32(y_dim))
    bd2 = 1.0 / jnp.sqrt(jnp.float32(feature_dim))
    params = {
        "lin1_w": jax.random.uniform(k_w1, (feature_dim, y_dim), jnp.float32, -bd1, bd1),
        "lin1_b": jax.random.uniform(k_b1, (feature_dim,), jnp.float32, -bd1, bd1),
        "embed1_w": jax.random.uniform(k_e1, (n_steps, feature_dim), jnp.float32, 0.0, 1.0),
        "lin2_w": jax.random.uniform(k_w2, (feature_dim, feature_dim), jnp.float32, -bd2, bd2),
        "lin2_b": jax.random.uniform(k_b2, (feature_dim,), jnp.float32, -bd2, bd2),
        "embed2_w": jax.random.uniform(k_e2, (n_steps, feature_dim), jnp.float32, 0.0, 1.0),
        "lin4_w": jax.random.uniform(k_w4, (y_dim, feature_dim), jnp.float32, -bd2, bd2),
        "lin4_b": jax.random.uniform(k_b4, (y_dim,), jnp.float32, -bd2, bd2),
    }

    x_feat = jax.random.normal(k_x, (B, feature_dim), jnp.float32)  # encoder_x(x)
    y = jax.random.normal(k_y, (B, y_dim), jnp.float32)
    t = jax.random.randint(k_t, (B,), 0, n_steps, jnp.int32)

    out = conditional_model_forward(x_feat, y, t, params)
    out = jax.block_until_ready(out)

    ref = _ref_forward(x_feat, y, t, params)
    assert out.shape == (B, y_dim)
    assert jnp.allclose(out, ref, atol=2e-2, rtol=2e-2), "mismatch vs reference"

    print("KERNEL_OK")
</pallas_src>

<mosaic_0001>
module attributes {stable_mosaic.version = 11 : i64} {
  func.func @_cond_model_kernel(%arg0: i32, %arg1: memref<8x1xi32, #tpu.memory_space<vmem>>, %arg2: memref<8x10xbf16, #tpu.memory_space<vmem>>, %arg3: memref<8x128xf32, #tpu.memory_space<vmem>>, %arg4: memref<10x128xbf16, #tpu.memory_space<vmem>>, %arg5: memref<1x128xf32, #tpu.memory_space<vmem>>, %arg6: memref<11x128xbf16, #tpu.memory_space<vmem>>, %arg7: memref<128x128xbf16, #tpu.memory_space<vmem>>, %arg8: memref<1x128xf32, #tpu.memory_space<vmem>>, %arg9: memref<11x128xbf16, #tpu.memory_space<vmem>>, %arg10: memref<128x10xbf16, #tpu.memory_space<vmem>>, %arg11: memref<1x10xf32, #tpu.memory_space<vmem>>, %arg12: memref<8x10xf32, #tpu.memory_space<vmem>>) attributes {dimension_semantics = [#tpu.dimension_semantics<parallel>], iteration_bounds = array<i64: 1>, scalar_prefetch = 0 : i64, scratch_operands = 0 : i64, tpu.core_type = #tpu.core_type<tc>, window_params = [{transform_indices = @transform_0, window_bounds = array<i64: 8, 1>}, {transform_indices = @transform_1, window_bounds = array<i64: 8, 10>}, {transform_indices = @transform_2, window_bounds = array<i64: 8, 128>}, {pipeline_mode = #tpu.pipeline_mode<synchronous>, transform_indices = @transform_3, window_bounds = array<i64: 10, 128>}, {pipeline_mode = #tpu.pipeline_mode<synchronous>, transform_indices = @transform_4, window_bounds = array<i64: 1, 128>}, {pipeline_mode = #tpu.pipeline_mode<synchronous>, transform_indices = @transform_5, window_bounds = array<i64: 11, 128>}, {pipeline_mode = #tpu.pipeline_mode<synchronous>, transform_indices = @transform_6, window_bounds = array<i64: 128, 128>}, {pipeline_mode = #tpu.pipeline_mode<synchronous>, transform_indices = @transform_7, window_bounds = array<i64: 1, 128>}, {pipeline_mode = #tpu.pipeline_mode<synchronous>, transform_indices = @transform_8, window_bounds = array<i64: 11, 128>}, {pipeline_mode = #tpu.pipeline_mode<synchronous>, transform_indices = @transform_9, window_bounds = array<i64: 128, 10>}, {pipeline_mode = #tpu.pipeline_mode<synchronous>, transform_indices = @transform_10, window_bounds = array<i64: 1, 10>}, {transform_indices = @transform_11, window_bounds = array<i64: 8, 10>}]} {
    %c0 = arith.constant 0 : index
    %c0_0 = arith.constant 0 : index
    %0 = vector.load %arg1[%c0, %c0_0] : memref<8x1xi32, #tpu.memory_space<vmem>>, vector<8x1xi32>
    %1 = tpu.iota {dimensions = array<i32: 1>} : vector<8x11xi32>
    %2 = vector.broadcast %0 : vector<8x1xi32> to vector<8x11xi32>
    %3 = arith.cmpi eq, %2, %1 : vector<8x11xi32>
    %4 = arith.extui %3 : vector<8x11xi1> to vector<8x11xi32>
    %5 = arith.sitofp %4 : vector<8x11xi32> to vector<8x11xf32>
    %6 = arith.truncf %5 : vector<8x11xf32> to vector<8x11xbf16>
    %c0_1 = arith.constant 0 : index
    %c0_2 = arith.constant 0 : index
    %7 = vector.load %arg6[%c0_1, %c0_2] : memref<11x128xbf16, #tpu.memory_space<vmem>>, vector<11x128xbf16>
    %cst = arith.constant dense<0.000000e+00> : vector<8x128xf32>
    %8 = tpu.matmul %6, %7, %cst {dimension_numbers = #tpu.dot_dimension_numbers<[1], [0], [0], [1], [0, 0, 1, 1], [], []>} : vector<8x11xbf16>, vector<11x128xbf16>, vector<8x128xf32> -> vector<8x128xf32>
    %c0_3 = arith.constant 0 : index
    %c0_4 = arith.constant 0 : index
    %9 = vector.load %arg9[%c0_3, %c0_4] : memref<11x128xbf16, #tpu.memory_space<vmem>>, vector<11x128xbf16>
    %cst_5 = arith.constant dense<0.000000e+00> : vector<8x128xf32>
    %10 = tpu.matmul %6, %9, %cst_5 {dimension_numbers = #tpu.dot_dimension_numbers<[1], [0], [0], [1], [0, 0, 1, 1], [], []>} : vector<8x11xbf16>, vector<11x128xbf16>, vector<8x128xf32> -> vector<8x128xf32>
    %c0_6 = arith.constant 0 : index
    %c0_7 = arith.constant 0 : index
    %11 = vector.load %arg2[%c0_6, %c0_7] : memref<8x10xbf16, #tpu.memory_space<vmem>>, vector<8x10xbf16>
    %c0_8 = arith.constant 0 : index
    %c0_9 = arith.constant 0 : index
    %12 = vector.load %arg4[%c0_8, %c0_9] : memref<10x128xbf16, #tpu.memory_space<vmem>>, vector<10x128xbf16>
    %cst_10 = arith.constant dense<0.000000e+00> : vector<8x128xf32>
    %13 = tpu.matmul %11, %12, %cst_10 {dimension_numbers = #tpu.dot_dimension_numbers<[1], [0], [0], [1], [0, 0, 1, 1], [], []>} : vector<8x10xbf16>, vector<10x128xbf16>, vector<8x128xf32> -> vector<8x128xf32>
    %c0_11 = arith.constant 0 : index
    %c0_12 = arith.constant 0 : index
    %14 = vector.load %arg5[%c0_11, %c0_12] : memref<1x128xf32, #tpu.memory_space<vmem>>, vector<1x128xf32>
    %15 = vector.broadcast %14 : vector<1x128xf32> to vector<8x128xf32>
    %16 = arith.addf %13, %15 : vector<8x128xf32>
    %17 = arith.mulf %8, %16 : vector<8x128xf32>
    %cst_13 = arith.constant 0.000000e+00 : f32
    %18 = vector.broadcast %cst_13 : f32 to vector<8x128xf32>
    %19 = arith.maximumf %17, %18 : vector<8x128xf32>
    %20 = math.absf %17 : vector<8x128xf32>
    %cst_14 = arith.constant 0.000000e+00 : f32
    %21 = vector.broadcast %cst_14 : f32 to vector<8x128xf32>
    %22 = arith.subf %21, %20 : vector<8x128xf32>
    %23 = math.exp %22 : vector<8x128xf32>
    %cst_15 = arith.constant 1.000000e+00 : f32
    %24 = vector.broadcast %cst_15 : f32 to vector<8x128xf32>
    %25 = arith.addf %24, %23 : vector<8x128xf32>
    %26 = math.log %25 : vector<8x128xf32>
    %27 = arith.addf %19, %26 : vector<8x128xf32>
    %c0_16 = arith.constant 0 : index
    %c0_17 = arith.constant 0 : index
    %28 = vector.load %arg3[%c0_16, %c0_17] : memref<8x128xf32, #tpu.memory_space<vmem>>, vector<8x128xf32>
    %29 = arith.mulf %28, %27 : vector<8x128xf32>
    %30 = arith.truncf %29 : vector<8x128xf32> to vector<8x128xbf16>
    %c0_18 = arith.constant 0 : index
    %c0_19 = arith.constant 0 : index
    %31 = vector.load %arg7[%c0_18, %c0_19] : memref<128x128xbf16, #tpu.memory_space<vmem>>, vector<128x128xbf16>
    %cst_20 = arith.constant dense<0.000000e+00> : vector<8x128xf32>
    %32 = tpu.matmul %30, %31, %cst_20 {dimension_numbers = #tpu.dot_dimension_numbers<[1], [0], [0], [1], [0, 0, 1, 1], [], []>} : vector<8x128xbf16>, vector<128x128xbf16>, vector<8x128xf32> -> vector<8x128xf32>
    %c0_21 = arith.constant 0 : index
    %c0_22 = arith.constant 0 : index
    %33 = vector.load %arg8[%c0_21, %c0_22] : memref<1x128xf32, #tpu.memory_space<vmem>>, vector<1x128xf32>
    %34 = vector.broadcast %33 : vector<1x128xf32> to vector<8x128xf32>
    %35 = arith.addf %32, %34 : vector<8x128xf32>
    %36 = arith.mulf %10, %35 : vector<8x128xf32>
    %cst_23 = arith.constant 0.000000e+00 : f32
    %37 = vector.broadcast %cst_23 : f32 to vector<8x128xf32>
    %38 = arith.maximumf %36, %37 : vector<8x128xf32>
    %39 = math.absf %36 : vector<8x128xf32>
    %cst_24 = arith.constant 0.000000e+00 : f32
    %40 = vector.broadcast %cst_24 : f32 to vector<8x128xf32>
    %41 = arith.subf %40, %39 : vector<8x128xf32>
    %42 = math.exp %41 : vector<8x128xf32>
    %cst_25 = arith.constant 1.000000e+00 : f32
    %43 = vector.broadcast %cst_25 : f32 to vector<8x128xf32>
    %44 = arith.addf %43, %42 : vector<8x128xf32>
    %45 = math.log %44 : vector<8x128xf32>
    %46 = arith.addf %38, %45 : vector<8x128xf32>
    %47 = arith.truncf %46 : vector<8x128xf32> to vector<8x128xbf16>
    %c0_26 = arith.constant 0 : index
    %c0_27 = arith.constant 0 : index
    %48 = vector.load %arg10[%c0_26, %c0_27] : memref<128x10xbf16, #tpu.memory_space<vmem>>, vector<128x10xbf16>
    %cst_28 = arith.constant dense<0.000000e+00> : vector<8x10xf32>
    %49 = tpu.matmul %47, %48, %cst_28 {dimension_numbers = #tpu.dot_dimension_numbers<[1], [0], [0], [1], [0, 0, 1, 1], [], []>} : vector<8x128xbf16>, vector<128x10xbf16>, vector<8x10xf32> -> vector<8x10xf32>
    %c0_29 = arith.constant 0 : index
    %c0_30 = arith.constant 0 : index
    %50 = vector.load %arg11[%c0_29, %c0_30] : memref<1x10xf32, #tpu.memory_space<vmem>>, vector<1x10xf32>
    %51 = vector.broadcast %50 : vector<1x10xf32> to vector<8x10xf32>
    %52 = arith.addf %49, %51 : vector<8x10xf32>
    %c0_31 = arith.constant 0 : index
    %c0_32 = arith.constant 0 : index
    %53 = vector.load %arg12[%c0_31, %c0_32] : memref<8x10xf32, #tpu.memory_space<vmem>>, vector<8x10xf32>
    tpu.vector_store %arg12[%c0_31, %c0_32], %52 {strides = array<i32>} : memref<8x10xf32, #tpu.memory_space<vmem>>, vector<8x10xf32>,
    return
  }
  func.func @transform_0(%arg0: i32) -> (i32, i32) {
    %c0_i32 = arith.constant 0 : i32
    %c0_i32_0 = arith.constant 0 : i32
    return %arg0, %c0_i32 : i32, i32
  }
  func.func @transform_1(%arg0: i32) -> (i32, i32) {
    %c0_i32 = arith.constant 0 : i32
    %c0_i32_0 = arith.constant 0 : i32
    return %arg0, %c0_i32 : i32, i32
  }
  func.func @transform_2(%arg0: i32) -> (i32, i32) {
    %c0_i32 = arith.constant 0 : i32
    %c0_i32_0 = arith.constant 0 : i32
    return %arg0, %c0_i32 : i32, i32
  }
  func.func @transform_3(%arg0: i32) -> (i32, i32) {
    %c0_i32 = arith.constant 0 : i32
    %c0_i32_0 = arith.constant 0 : i32
    %c0_i32_1 = arith.constant 0 : i32
    return %c0_i32, %c0_i32_0 : i32, i32
  }
  func.func @transform_4(%arg0: i32) -> (i32, i32) {
    %c0_i32 = arith.constant 0 : i32
    %c0_i32_0 = arith.constant 0 : i32
    %c0_i32_1 = arith.constant 0 : i32
    return %c0_i32, %c0_i32_0 : i32, i32
  }
  func.func @transform_5(%arg0: i32) -> (i32, i32) {
    %c0_i32 = arith.constant 0 : i32
    %c0_i32_0 = arith.constant 0 : i32
    %c0_i32_1 = arith.constant 0 : i32
    return %c0_i32, %c0_i32_0 : i32, i32
  }
  func.func @transform_6(%arg0: i32) -> (i32, i32) {
    %c0_i32 = arith.constant 0 : i32
    %c0_i32_0 = arith.constant 0 : i32
    %c0_i32_1 = arith.constant 0 : i32
    return %c0_i32, %c0_i32_0 : i32, i32
  }
  func.func @transform_7(%arg0: i32) -> (i32, i32) {
    %c0_i32 = arith.constant 0 : i32
    %c0_i32_0 = arith.constant 0 : i32
    %c0_i32_1 = arith.constant 0 : i32
    return %c0_i32, %c0_i32_0 : i32, i32
  }
  func.func @transform_8(%arg0: i32) -> (i32, i32) {
    %c0_i32 = arith.constant 0 : i32
    %c0_i32_0 = arith.constant 0 : i32
    %c0_i32_1 = arith.constant 0 : i32
    return %c0_i32, %c0_i32_0 : i32, i32
  }
  func.func @transform_9(%arg0: i32) -> (i32, i32) {
    %c0_i32 = arith.constant 0 : i32
    %c0_i32_0 = arith.constant 0 : i32
    %c0_i32_1 = arith.constant 0 : i32
    return %c0_i32, %c0_i32_0 : i32, i32
  }
  func.func @transform_10(%arg0: i32) -> (i32, i32) {
    %c0_i32 = arith.constant 0 : i32
    %c0_i32_0 = arith.constant 0 : i32
    %c0_i32_1 = arith.constant 0 : i32
    return %c0_i32, %c0_i32_0 : i32, i32
  }
  func.func @transform_11(%arg0: i32) -> (i32, i32) {
    %c0_i32 = arith.constant 0 : i32
    %c0_i32_0 = arith.constant 0 : i32
    return %arg0, %c0_i32 : i32, i32
  }
}

</mosaic_0001>

<bundles_post_ra>
// kernel: tpu_custom_call.1
= control target key start
LH: loop header
LB: loop body
LE: loop exit
PB: predicated region body
PF: predicated region fallthrough
CT: control target
= control target key end

     0   :  { %16 = vsyncpa [#allocation3], 0  ;;  %s936_s0 = inlined_call_operand.vmem [shape: s32[8,1], index: 0, kind: input, shape index: {}]   ;;  %s937_s1 = inlined_call_operand.vmem [shape: bf16[8,10], index: 1, kind: input, shape index: {}]   ;;  %s938_s2 = inlined_call_operand.vmem [shape: f32[8,128], index: 2, kind: input, shape index: {}]   ;;  %s939_s3 = inlined_call_operand.vmem [shape: bf16[10,128], index: 3, kind: input, shape index: {}]   ;;  %s940_s4 = inlined_call_operand.vmem [shape: f32[1,128], index: 4, kind: input, shape index: {}]   ;;  %s941_s5 = inlined_call_operand.hbm [shape: bf16[11,128], index: 5, kind: input, shape index: {}]   ;;  %s942_s6 = inlined_call_operand.vmem [shape: bf16[128,128], index: 6, kind: input, shape index: {}]   ;;  %s943_s7 = inlined_call_operand.hbm [shape: f32[1,128], index: 7, kind: input, shape index: {}]   ;;  %s944_s8 = inlined_call_operand.hbm [shape: bf16[11,128], index: 8, kind: input, shape index: {}]   ;;  %s945_s9 = inlined_call_operand.vmem [shape: bf16[128,10], index: 9, kind: input, shape index: {}]   ;;  %s946_s10 = inlined_call_operand.vmem [shape: f32[1,10], index: 10, kind: input, shape index: {}]   ;;  %s947_s11 = inlined_call_operand.hbm [shape: f32[8,10], index: 11, kind: output, shape index: {}]  }
   0x1   :  { %17 = vsyncpa [#allocation6], 0 }
   0x2   :  { %18 = vsyncpa [#allocation4], 0  ;;  %s754_s17 = smov [#allocation5]   ;;  %s755_s19 = smov [#allocation2]  }
   0x3   :  { %s49_s18 = sshll.u32 %s754_s17, 4  ;;  %s34_s20 = sshll.u32 %s755_s19, 4  ;;  %s50_s18 = int_to_ptr.vmem [resolvable:$true] %s49_s18  ;;  %s35_s20 = int_to_ptr.vmem [resolvable:$true] %s34_s20 }
   0x4   :  { %s676_s21 = scalar_lea.vmem %s50_s18, 16  ;;  %s680_s22 = scalar_lea.vmem %s50_s18, 32 }
   0x5   :  { %p677_p0 = scmp.ne.s32.totalorder %s50_s18, %s676_s21  ;;  %p681_p1 = scmp.lt.s32.totalorder %s50_s18, %s50_s18 }
   0x6   :  { %p682_p2 = scmp.lt.s32.totalorder %s680_s22, %s676_s21 }
   0x8   :  { %p683_p3 = por %p682_p2, %p681_p1 }
   0xa   :  { %p684_p4 = pnand %p683_p3, %p677_p0 }
   0xc   :  { %687 = shalt.err (!%p684_p4)
}
   0xd   :  { %52 = dma.hbm_to_vmem [thread:$0]  %s943_s7, 16, %s50_s18, [#allocation6]  }
   0xe   :  { %s696_s25 = scalar_lea.vmem %s35_s20, 128  ;;  %p701_p6 = scmp.lt.s32.totalorder %s35_s20, %s35_s20 }
   0xf   :  { %p697_p5 = scmp.ne.s32.totalorder %s35_s20, %s696_s25  ;;  %p702_p7 = scmp.lt.s32.totalorder %s696_s25, %s696_s25 }
  0x11   :  { %p703_p8 = por %p702_p7, %p701_p6 }
  0x13   :  { %p704_p9 = pnand %p703_p8, %p697_p5 }
  0x15   :  { %707 = shalt.err (!%p704_p9)
}
  0x16   :  { %s756_s26 = smov 64   ;;  %s757_s27 = smov 4  }
  0x17   :  { %40 = dma.hbm_to_vmem [thread:$0]  %s941_s5, 128, %s35_s20, [#allocation3], %s756_s26, %s756_s26, %s757_s27  }
  0x18   :  { %s758_s30 = smov [#allocation7]  }
  0x19   :  { %s58_s12 = sshll.u32 %s758_s30, 4  ;;  %s59_s12 = int_to_ptr.vmem [resolvable:$true] %s58_s12 }
  0x1a   :  { %s716_s13 = scalar_lea.vmem %s59_s12, 128  ;;  %p721_p11 = scmp.lt.s32.totalorder %s59_s12, %s59_s12 }
  0x1b   :  { %p717_p10 = scmp.ne.s32.totalorder %s59_s12, %s716_s13  ;;  %p722_p12 = scmp.lt.s32.totalorder %s716_s13, %s716_s13 }
  0x1d   :  { %p723_p13 = por %p722_p12, %p721_p11 }
  0x1f   :  { %p724_p0 = pnand %p723_p13, %p717_p10 }
  0x21   :  { %727 = shalt.err (!%p724_p0)
}
  0x22   :  { %64 = dma.hbm_to_vmem [thread:$0]  %s944_s8, 128, %s59_s12, [#allocation6], %s756_s26, %s756_s26, %s757_s27  }
  0x23   :  { %748 = dma.done.wait [#allocation3], 128  }
  0x24   :  { %749 = vsyncadd [#allocation3], 4294967168 }
  0x25   :  { %750 = dma.done.wait [#allocation6], 144  }
  0x26   :  { %751 = vsyncadd [#allocation6], 4294967152  ;;  %v759_v0 = vmov 0   ;;  %v760_v1 = vmov 0.0   ;;  %vm100_vm0 = vcmask 1044480   ;;  %vm101_vm1 = vcmask 1045504  }
  0x27   :  { %640 = vset.pattern.permute.xlu0 %v759_v0  ;;  %572 = vmatprep.subr.bf16.mxu0 %v760_v1  ;;  %v761_v2 = vmov 65535   ;;  %v79_v4 = vld [vmem:[%s936_s0] sm:$0xff]  ;;  %vm762_vm2 = vmmov 0   ;;  %v642_v7 = vld [vmem:[#allocation7] sm:$0x3f]   ;;  %v80_v10 = vlaneseq  ;;  %vm96_vm4 = vcmask 89088  }
  0x28   :  { %578 = vmatprep.subr.bf16.mxu1 %v760_v1  ;;  %v102_v3 = vsel %vm100_vm0, 4294967295, %v761_v2  ;;  %574 = vmatprep.mubr.msk.bf16.mxu0 %vm762_vm2, %v760_v1  ;;  %v641_v6 = vld [vmem:[#allocation2] sm:$0x3f]   ;;  %vm212_vm5 = vcmask 80896   ;;  %v644_v18 = vld [vmem:[%s942_s6 + $0x38] sm:$0xff]   ;;  %v645_v19 = vld [vmem:[%s942_s6 + $0x30] sm:$0xff]  }
  0x29   :  { %v103_v5 = vsel %vm101_vm1, %v102_v3, 0  ;;  %580 = vmatprep.mubr.msk.bf16.mxu1 %vm762_vm2, %v760_v1  ;;  %83 = vperm.xlu0 %640, %v79_v4   ;;  %v81_v11 = vand.u32 127, %v80_v10  ;;  %v643_v12 = vld [vmem:[%s939_s3] sm:$0x1f]   ;;  %v646_v20 = vld [vmem:[%s942_s6 + $0x28] sm:$0xff]   ;;  %v648_v22 = vld [vmem:[%s942_s6 + $0x18] sm:$0xff]  }
  0x2a   :  { %v105_v8 = vand.u32 %v641_v6, %v103_v5  ;;  %v155_v9 = vand.u32 %v642_v7, %v103_v5  ;;  %v217_v16 = vsel %vm100_vm0, %v643_v12, 0  ;;  %v197_v17 = vld [vmem:[%s937_s1] sm:$0xf]  ;;  %v649_v23 = vld [vmem:[%s942_s6 + $0x10] sm:$0xff]   ;;  %v650_v24 = vld [vmem:[%s942_s6 + $0x8] sm:$0xff]   ;;  %s763_s25 = smov [#allocation8]  }
  0x2b   :  { %v647_v21 = vld [vmem:[%s942_s6 + $0x20] sm:$0xff]   ;;  %v652_v53 = vld [vmem:[%s945_s9 + $0x38] sm:$0xff]   ;;  %v653_v54 = vld [vmem:[%s945_s9 + $0x30] sm:$0xff]   ;;  %s512_s26 = sshll.u32 %s763_s25, 4  ;;  %s513_s26 = int_to_ptr.vmem [resolvable:$true] %s512_s26 }
  0x2c   :  { %573 = vmatpush3.bf16.msra.mxu0 %v105_v8  ;;  %579 = vmatpush3.bf16.msra.mxu1 %v155_v9  ;;  %v651_v25 = vld [vmem:[%s942_s6] sm:$0xff]   ;;  %v654_v55 = vld [vmem:[%s945_s9 + $0x28] sm:$0xff]   ;;  %v656_v57 = vld [vmem:[%s945_s9 + $0x18] sm:$0xff]   ;;  %s728_s27 = scalar_lea.vmem %s513_s26, 128  ;;  %p733_p2 = scmp.lt.s32.totalorder %s513_s26, %s513_s26 }
  0x2d   :  { %584 = vmatprep.subr.bf16.mxu0 %v760_v1  ;;  %590 = vmatprep.subr.bf16.mxu1 %v760_v1  ;;  %v527_v34 = vld [vmem:[%s940_s4] ss:$0 sm:$0xff]  ;;  %v657_v58 = vld [vmem:[%s945_s9 + $0x10] sm:$0xff]   ;;  %v658_v59 = vld [vmem:[%s945_s9 + $0x8] sm:$0xff]   ;;  %p729_p1 = scmp.ne.s32.totalorder %s513_s26, %s728_s27  ;;  %p734_p3 = scmp.lt.s32.totalorder %s728_s27, %s728_s27 }
  0x2e   :  { %v269_v49 = vld [vmem:[%s938_s2] sm:$0xff]  ;;  %v530_v61 = vld [vmem:[#allocation5] ss:$0 sm:$0xff] }
  0x2f   :  { %v655_v56 = vld [vmem:[%s945_s9 + $0x20] sm:$0xff]   ;;  %p735_p4 = por %p734_p3, %p733_p2 }
  0x30   :  { %v659_v60 = vld [vmem:[%s945_s9] sm:$0xff]  }
  0x31   :  { %p736_p5 = pnand %p735_p4, %p729_p1 }
  0xa4   :  { %v84_v13 = vpop.permute.xlu0 %83 }
  0xa5   :  { %vm85_vm3 = vcmp.eq.s32.totalorder %v84_v13, %v81_v11 }
  0xa6   :  { %v522_v14 = vsel %vm85_vm3, 1.0, %v760_v1 }
  0xa7   :  { %v88_v15 = vpack.c.bf16 %v522_v14, %v522_v14  ;;  %v539_v14 = vld [vmem:[%s946_s10] ss:$0 sm:$0xff] }
  0xa9   :  { %575 = vmatmul.mubr.msk.bf16.vlgmr.msra.gmra.mxu0 %vm96_vm4, %v88_v15  ;;  %581 = vmatmul.mubr.msk.bf16.vlgmr.msra.gmra.mxu1 %vm96_vm4, %v88_v15 }
  0xaa   :  { %585 = vmatpush3.bf16.msra.mxu0 %v217_v16  ;;  %586 = vmatprep.mubr.msk.bf16.mxu0 %vm762_vm2, %v760_v1 }
  0xab   :  { %606 = vmatprep.mubr.msk.bf16.mxu1 %vm762_vm2, %v760_v1  ;;  %610 = vmatprep.subr.bf16.mxu0 %v760_v1 }
  0xac   :  { %591 = vmatpush3.bf16.msra.mxu1 %v644_v18 }
  0xad   :  { %592 = vmatprep.subr.bf16.mxu1 %v760_v1 }
  0xb0   :  { %593 = vmatpush3.bf16.msra.mxu1 %v645_v19 }
  0xb1   :  { %587 = vmatmul.mubr.msk.bf16.vlgmr.msra.gmra.mxu0 %vm212_vm5, %v197_v17  ;;  %594 = vmatprep.subr.bf16.mxu1 %v760_v1 }
  0xb2   :  { %626 = vmatprep.mubr.msk.bf16.mxu0 %vm762_vm2, %v760_v1  ;;  %611 = vmatpush3.bf16.msra.mxu0 %v652_v53 }
  0xb3   :  { %612 = vmatprep.subr.bf16.mxu0 %v760_v1 }
  0xb4   :  { %595 = vmatpush3.bf16.msra.mxu1 %v646_v20 }
  0xb5   :  { %596 = vmatprep.subr.bf16.mxu1 %v760_v1 }
  0xb6   :  { %613 = vmatpush3.bf16.msra.mxu0 %v653_v54 }
  0xb7   :  { %614 = vmatprep.subr.bf16.mxu0 %v760_v1 }
  0xb8   :  { %597 = vmatpush3.bf16.msra.mxu1 %v647_v21 }
  0xb9   :  { %598 = vmatprep.subr.bf16.mxu1 %v760_v1 }
  0xba   :  { %615 = vmatpush3.bf16.msra.mxu0 %v654_v55 }
  0xbb   :  { %616 = vmatprep.subr.bf16.mxu0 %v760_v1 }
  0xbc   :  { %599 = vmatpush3.bf16.msra.mxu1 %v648_v22 }
  0xbd   :  { %600 = vmatprep.subr.bf16.mxu1 %v760_v1 }
  0xbe   :  { %617 = vmatpush3.bf16.msra.mxu0 %v655_v56 }
  0xbf   :  { %618 = vmatprep.subr.bf16.mxu0 %v760_v1 }
  0xc0   :  { %601 = vmatpush3.bf16.msra.mxu1 %v649_v23 }
  0xc1   :  { %602 = vmatprep.subr.bf16.mxu1 %v760_v1 }
  0xc2   :  { %619 = vmatpush3.bf16.msra.mxu0 %v656_v57 }
  0xc3   :  { %620 = vmatprep.subr.bf16.mxu0 %v760_v1 }
  0xc4   :  { %603 = vmatpush3.bf16.msra.mxu1 %v650_v24 }
  0xc5   :  { %604 = vmatprep.subr.bf16.mxu1 %v760_v1 }
  0xc6   :  { %621 = vmatpush3.bf16.msra.mxu0 %v657_v58 }
  0xc7   :  { %622 = vmatprep.subr.bf16.mxu0 %v760_v1 }
  0xc8   :  { %605 = vmatpush3.bf16.msra.mxu1 %v651_v25 }
  0xca   :  { %623 = vmatpush3.bf16.msra.mxu0 %v658_v59 }
  0xcb   :  { %624 = vmatprep.subr.bf16.mxu0 %v760_v1 }
  0xce   :  { %625 = vmatpush3.bf16.msra.mxu0 %v659_v60 }
 0x169   :  { %v141_v26 = vpop.f32.mrf.mxu0  ;;  %v191_v27 = vpop.f32.mrf.mxu1 }
 0x16b   :  { %v576_v28 = vpop.f32.mrf.mxu0  ;;  %v582_v29 = vpop.f32.mrf.mxu1 }
 0x16d   :  { %v144_v30 = vpop.f32.mrf.mxu0  ;;  %v194_v31 = vpop.f32.mrf.mxu1 }
 0x16f   :  { %v577_v32 = vpop.f32.mrf.mxu0  ;;  %v583_v33 = vpop.f32.mrf.mxu1 }
 0x171   :  { %v253_v35 = vpop.f32.mrf.mxu0 }
 0x172   :  { %v254_v36 = vadd.f32 %v527_v34, %v253_v35 }
 0x173   :  { %v588_v37 = vpop.f32.mrf.mxu0 }
 0x174   :  { %v259_v38 = vmul.f32 %v254_v36, %v141_v26 }
 0x175   :  { %v256_v39 = vpop.f32.mrf.mxu0 }
 0x176   :  { %v261_v40 = vand.u32 2147483647, %v259_v38  ;;  %v260_v47 = vmax.f32 %v259_v38, 0.0 }
 0x177   :  { %v589_v41 = vpop.f32.mrf.mxu0 }
 0x178   :  { %v262_v42 = vsub.f32 0.0, %v261_v40 }
 0x17a   :  { %v263_v43 = vmul.f32 1.442695, %v262_v42 }
 0x17c   :  { %660 = vpow2.f32 %v263_v43 }
 0x189   :  { %v661_v44 = vpop.eup %660 }
 0x18a   :  { %v265_v45 = vadd.f32 1.0, %v661_v44 }
 0x18c   :  { %662 = vlog2.f32 %v265_v45 }
 0x199   :  { %v663_v46 = vpop.eup %662 }
 0x19a   :  { %v267_v48 = vmul.f32 0.6931472, %v663_v46 }
 0x19c   :  { %v268_v50 = vadd.f32 %v267_v48, %v260_v47 }
 0x19e   :  { %v270_v51 = vmul.f32 %v269_v49, %v268_v50 }
 0x1a0   :  { %v271_v52 = vpack.c.bf16 %v270_v51, %v270_v51 }
 0x1a2   :  { %607 = vmatmul.mubr.bf16.vlgmr.msra.gmra.mxu1 %v271_v52 }
 0x262   :  { %v377_v62 = vpop.f32.mrf.mxu1 }
 0x263   :  { %v378_v63 = vadd.f32 %v530_v61, %v377_v62 }
 0x264   :  { %v608_v0 = vpop.f32.mrf.mxu1 }
 0x265   :  { %v383_v2 = vmul.f32 %v378_v63, %v191_v27 }
 0x266   :  { %v380_v3 = vpop.f32.mrf.mxu1 }
 0x267   :  { %v385_v4 = vand.u32 2147483647, %v383_v2  ;;  %v384_v10 = vmax.f32 %v383_v2, 0.0 }
 0x268   :  { %v609_v5 = vpop.f32.mrf.mxu1 }
 0x269   :  { %v386_v6 = vsub.f32 0.0, %v385_v4 }
 0x26b   :  { %v387_v7 = vmul.f32 1.442695, %v386_v6 }
 0x26d   :  { %664 = vpow2.f32 %v387_v7 }
 0x27a   :  { %v665_v8 = vpop.eup %664 }
 0x27b   :  { %v389_v9 = vadd.f32 1.0, %v665_v8 }
 0x27d   :  { %666 = vlog2.f32 %v389_v9 }
 0x28a   :  { %v667_v1 = vpop.eup %666 }
 0x28b   :  { %v391_v11 = vmul.f32 0.6931472, %v667_v1 }
 0x28d   :  { %v392_v12 = vadd.f32 %v391_v11, %v384_v10 }
 0x28f   :  { %v393_v13 = vpack.c.bf16 %v392_v12, %v392_v12 }
 0x291   :  { %627 = vmatmul.mubr.bf16.vlgmr.msra.gmra.mxu0 %v393_v13 }
 0x351   :  { %v499_v15 = vpop.f32.mrf.mxu0 }
 0x352   :  { %v500_v16 = vadd.f32 %v539_v14, %v499_v15 }
 0x353   :  { %v628_v17 = vpop.f32.mrf.mxu0 }
 0x354   :  { %505 = vst.msk [vmem:[#allocation8] sm:$0xff] %vm212_vm5, %v500_v16 }
 0x355   :  { %v502_v18 = vpop.f32.mrf.mxu0 }
 0x356   :  { %739 = shalt.err (!%p736_p5)
}
 0x357   :  { %515 = dma.vmem_to_hbm [thread:$0]  %s513_s26, 128, %s947_s11, [#allocation4]   ;;  %v629_v19 = vpop.f32.mrf.mxu0 }
 0x358   :  { %752 = dma.done.wait [#allocation4], 128  }
 0x359   :  { %753 = vsyncadd [#allocation4], 4294967168 }
 0x35a   :  { %519 = vsyncpa [#allocation3], 1 }
 0x35b   :  { %520 = vsyncpa [#allocation6], 1 }
 0x35c   :  { %521 = vsyncpa [#allocation4], 1 }

</bundles_post_ra>
